<compile_context>
chip_gen: v5e
topology: v5e:2x2
jax: 0.10.0
libtpu: 0.0.40
codegen_flags: <defaults>
</compile_context>

<pallas_src>
import jax
import jax.numpy as jnp
from jax.experimental import pallas as pl
from jax.experimental.pallas import tpu as pltpu

REPEAT = 6

_IN_BLOCK_BYTES = 1 * 1024 * 1024        # target input-tile size (~1 MiB)
_MAX_BLOCK_BYTES = 3 * _IN_BLOCK_BYTES   # bail-out threshold for bad divisors
_VMEM_LIMIT_BYTES = 32 * 1024 * 1024     # fits every generation's physical VMEM


def _repeat_kernel(x_ref, o_ref):
    # One grid step: copy one input tile into all REPEAT output slots.
    # Works for both the 3-D (B, REPEAT, t_f) and 4-D (B, REPEAT, t_s, D)
    # output blocks: o_ref[:, r] squeezes the repeat axis and matches x_ref.
    for r in range(REPEAT):              # static unroll: 6 lane-dense stores
        o_ref[:, r] = x_ref[...]


def _pick_tile(total, align, cap):
    """Largest divisor of `total` that is a multiple of `align` and <= cap.

    Falls back to the smallest aligned divisor if none fits the cap, or to
    `total` itself (full-extent block, always layout-legal) if no divisor is
    aligned.
    """
    cands = []
    i = 1
    while i * i <= total:
        if total % i == 0:
            for d in (i, total // i):
                if d % align == 0:
                    cands.append(d)
        i += 1
    if not cands:
        return total
    good = [d for d in cands if d <= cap]
    return max(good) if good else min(cands)


def attention_upsampling_reference(x, x0=None):
    """Pure-JAX reference (== torch .repeat(1, 6, 1))."""
    B, S, D = x.shape
    return jnp.broadcast_to(x[:, None], (B, REPEAT, S, D)).reshape(B, REPEAT * S, D)


def attention_upsampling(x, x0=None):
    """Pallas implementation of AttentionUpsampling.forward (x0 is ignored)."""
    B, S, D = x.shape
    itemsize = jnp.dtype(x.dtype).itemsize
    flat = S * D

    cost = pl.CostEstimate(
        flops=0,
        transcendentals=0,
        bytes_accessed=(1 + REPEAT) * B * flat * itemsize,
    )
    cparams = pltpu.CompilerParams(
        dimension_semantics=("parallel",),
        vmem_limit_bytes=_VMEM_LIMIT_BYTES,
    )

    # Lane-dense path: if D itself isn't lane-aligned but S*D is, flatten the
    # feature axes so the last dim of every block is a multiple of 128.
    if (D % 128 != 0) and (flat % 128 == 0):
        cap = max(128, _IN_BLOCK_BYTES // max(1, B * itemsize))
        t_f = _pick_tile(flat, 128, cap)
        if B * t_f * itemsize > _MAX_BLOCK_BYTES:
            return attention_upsampling_reference(x, x0)
        num_f = flat // t_f

        out2 = pl.pallas_call(
            _repeat_kernel,
            out_shape=jax.ShapeDtypeStruct((B, REPEAT, flat), x.dtype),
            grid_spec=pltpu.PrefetchScalarGridSpec(
                num_scalar_prefetch=0,
                grid=(num_f,),
                in_specs=[pl.BlockSpec((B, t_f), lambda f: (0, f))],
                out_specs=pl.BlockSpec((B, REPEAT, t_f), lambda f: (0, 0, f)),
            ),
            compiler_params=cparams,
            cost_estimate=cost,
        )(x.reshape(B, flat))
        # Free row-major reshape; layout already matches repeat(1, 6, 1).
        return out2.reshape(B, REPEAT * S, D)

    # Generic path (D lane-aligned or flat not 128-divisible): keep D whole,
    # tile S on sublane-aligned divisors.
    pack = max(8, 8 * (4 // itemsize))  # 8 for f32, 16 for bf16, 32 for int8
    cap = max(1, _IN_BLOCK_BYTES // max(1, B * D * itemsize))
    t_s = _pick_tile(S, pack, cap)
    if B * t_s * D * itemsize > _MAX_BLOCK_BYTES:
        return attention_upsampling_reference(x, x0)
    num_s = S // t_s

    out4 = pl.pallas_call(
        _repeat_kernel,
        out_shape=jax.ShapeDtypeStruct((B, REPEAT, S, D), x.dtype),
        grid_spec=pltpu.PrefetchScalarGridSpec(
            num_scalar_prefetch=0,
            grid=(num_s,),
            in_specs=[pl.BlockSpec((B, t_s, D), lambda i: (0, i, 0))],
            out_specs=pl.BlockSpec((B, REPEAT, t_s, D), lambda i: (0, 0, i, 0)),
        ),
        compiler_params=cparams,
        cost_estimate=cost,
    )(x)
    return out4.reshape(B, REPEAT * S, D)


if __name__ == "__main__":
    key = jax.random.PRNGKey(0)
    k1, k2, k3 = jax.random.split(key, 3)

    # Small shapes consistent with the module's forward: (batch, seq, hidden).
    B, S, D = 2, 8, 32
    x = jax.random.normal(k1, (B, S, D), dtype=jnp.float32)
    x0 = jax.random.normal(k2, (B, 4 * S, D), dtype=jnp.float32)  # unused, as in torch

    out = attention_upsampling(x, x0)
    out = jax.block_until_ready(out)
    ref = attention_upsampling_reference(x, x0)
    assert out.shape == (B, REPEAT * S, D), out.shape
    assert jnp.allclose(out, ref), "mismatch vs reference (flat path)"

    # Also exercise the generic (lane-aligned D) path.
    x_b = jax.random.normal(k3, (2, 16, 128), dtype=jnp.float32)
    out_b = jax.block_until_ready(attention_upsampling(x_b))
    ref_b = attention_upsampling_reference(x_b)
    assert out_b.shape == (2, REPEAT * 16, 128), out_b.shape
    assert jnp.allclose(out_b, ref_b), "mismatch vs reference (generic path)"

    print("KERNEL_OK")
</pallas_src>

<mosaic_0001>
module attributes {stable_mosaic.version = 11 : i64} {
  func.func @_repeat_kernel(%arg0: i32, %arg1: memref<2x256xf32, #tpu.memory_space<vmem>>, %arg2: memref<2x6x256xf32, #tpu.memory_space<vmem>>) attributes {dimension_semantics = [#tpu.dimension_semantics<parallel>], iteration_bounds = array<i64: 1>, scalar_prefetch = 0 : i64, scratch_operands = 0 : i64, tpu.core_type = #tpu.core_type<tc>, window_params = [{transform_indices = @transform_0, window_bounds = array<i64: 2, 256>}, {transform_indices = @transform_1, window_bounds = array<i64: 2, 6, 256>}]} {
    %c0 = arith.constant 0 : index
    %c0_0 = arith.constant 0 : index
    %0 = vector.load %arg1[%c0, %c0_0] : memref<2x256xf32, #tpu.memory_space<vmem>>, vector<2x256xf32>
    %c0_1 = arith.constant 0 : index
    %c0_2 = arith.constant 0 : index
    %c0_3 = arith.constant 0 : index
    %1 = vector.load %arg2[%c0_1, %c0_2, %c0_3] : memref<2x6x256xf32, #tpu.memory_space<vmem>>, vector<2x1x256xf32>
    %2 = vector.shape_cast %1 : vector<2x1x256xf32> to vector<2x256xf32>
    %3 = vector.shape_cast %0 : vector<2x256xf32> to vector<2x1x256xf32>
    tpu.vector_store %arg2[%c0_1, %c0_2, %c0_3], %3 {strides = array<i32>} : memref<2x6x256xf32, #tpu.memory_space<vmem>>, vector<2x1x256xf32>,
    %c0_4 = arith.constant 0 : index
    %c0_5 = arith.constant 0 : index
    %4 = vector.load %arg1[%c0_4, %c0_5] : memref<2x256xf32, #tpu.memory_space<vmem>>, vector<2x256xf32>
    %c0_6 = arith.constant 0 : index
    %c1 = arith.constant 1 : index
    %c0_7 = arith.constant 0 : index
    %5 = vector.load %arg2[%c0_6, %c1, %c0_7] : memref<2x6x256xf32, #tpu.memory_space<vmem>>, vector<2x1x256xf32>
    %6 = vector.shape_cast %5 : vector<2x1x256xf32> to vector<2x256xf32>
    %7 = vector.shape_cast %4 : vector<2x256xf32> to vector<2x1x256xf32>
    tpu.vector_store %arg2[%c0_6, %c1, %c0_7], %7 {strides = array<i32>} : memref<2x6x256xf32, #tpu.memory_space<vmem>>, vector<2x1x256xf32>,
    %c0_8 = arith.constant 0 : index
    %c0_9 = arith.constant 0 : index
    %8 = vector.load %arg1[%c0_8, %c0_9] : memref<2x256xf32, #tpu.memory_space<vmem>>, vector<2x256xf32>
    %c0_10 = arith.constant 0 : index
    %c2 = arith.constant 2 : index
    %c0_11 = arith.constant 0 : index
    %9 = vector.load %arg2[%c0_10, %c2, %c0_11] : memref<2x6x256xf32, #tpu.memory_space<vmem>>, vector<2x1x256xf32>
    %10 = vector.shape_cast %9 : vector<2x1x256xf32> to vector<2x256xf32>
    %11 = vector.shape_cast %8 : vector<2x256xf32> to vector<2x1x256xf32>
    tpu.vector_store %arg2[%c0_10, %c2, %c0_11], %11 {strides = array<i32>} : memref<2x6x256xf32, #tpu.memory_space<vmem>>, vector<2x1x256xf32>,
    %c0_12 = arith.constant 0 : index
    %c0_13 = arith.constant 0 : index
    %12 = vector.load %arg1[%c0_12, %c0_13] : memref<2x256xf32, #tpu.memory_space<vmem>>, vector<2x256xf32>
    %c0_14 = arith.constant 0 : index
    %c3 = arith.constant 3 : index
    %c0_15 = arith.constant 0 : index
    %13 = vector.load %arg2[%c0_14, %c3, %c0_15] : memref<2x6x256xf32, #tpu.memory_space<vmem>>, vector<2x1x256xf32>
    %14 = vector.shape_cast %13 : vector<2x1x256xf32> to vector<2x256xf32>
    %15 = vector.shape_cast %12 : vector<2x256xf32> to vector<2x1x256xf32>
    tpu.vector_store %arg2[%c0_14, %c3, %c0_15], %15 {strides = array<i32>} : memref<2x6x256xf32, #tpu.memory_space<vmem>>, vector<2x1x256xf32>,
    %c0_16 = arith.constant 0 : index
    %c0_17 = arith.constant 0 : index
    %16 = vector.load %arg1[%c0_16, %c0_17] : memref<2x256xf32, #tpu.memory_space<vmem>>, vector<2x256xf32>
    %c0_18 = arith.constant 0 : index
    %c4 = arith.constant 4 : index
    %c0_19 = arith.constant 0 : index
    %17 = vector.load %arg2[%c0_18, %c4, %c0_19] : memref<2x6x256xf32, #tpu.memory_space<vmem>>, vector<2x1x256xf32>
    %18 = vector.shape_cast %17 : vector<2x1x256xf32> to vector<2x256xf32>
    %19 = vector.shape_cast %16 : vector<2x256xf32> to vector<2x1x256xf32>
    tpu.vector_store %arg2[%c0_18, %c4, %c0_19], %19 {strides = array<i32>} : memref<2x6x256xf32, #tpu.memory_space<vmem>>, vector<2x1x256xf32>,
    %c0_20 = arith.constant 0 : index
    %c0_21 = arith.constant 0 : index
    %20 = vector.load %arg1[%c0_20, %c0_21] : memref<2x256xf32, #tpu.memory_space<vmem>>, vector<2x256xf32>
    %c0_22 = arith.constant 0 : index
    %c5 = arith.constant 5 : index
    %c0_23 = arith.constant 0 : index
    %21 = vector.load %arg2[%c0_22, %c5, %c0_23] : memref<2x6x256xf32, #tpu.memory_space<vmem>>, vector<2x1x256xf32>
    %22 = vector.shape_cast %21 : vector<2x1x256xf32> to vector<2x256xf32>
    %23 = vector.shape_cast %20 : vector<2x256xf32> to vector<2x1x256xf32>
    tpu.vector_store %arg2[%c0_22, %c5, %c0_23], %23 {strides = array<i32>} : memref<2x6x256xf32, #tpu.memory_space<vmem>>, vector<2x1x256xf32>,
    return
  }
  func.func @transform_0(%arg0: i32) -> (i32, i32) {
    %c0_i32 = arith.constant 0 : i32
    %c0_i32_0 = arith.constant 0 : i32
    return %c0_i32, %arg0 : i32, i32
  }
  func.func @transform_1(%arg0: i32) -> (i32, i32, i32) {
    %c0_i32 = arith.constant 0 : i32
    %c0_i32_0 = arith.constant 0 : i32
    %c0_i32_1 = arith.constant 0 : i32
    return %c0_i32, %c0_i32_0, %arg0 : i32, i32, i32
  }
}

</mosaic_0001>

<bundles_post_ra>
// kernel: tpu_custom_call.1
= control target key start
LH: loop header
LB: loop body
LE: loop exit
PB: predicated region body
PF: predicated region fallthrough
CT: control target
= control target key end

     0   :  { %6 = vsyncpa [#allocation3], 0  ;;  %s194_s9 = smov [#allocation2]   ;;  %s308_s0 = inlined_call_operand.hbm [shape: f32[2,256], index: 0, kind: input, shape index: {}]   ;;  %s309_s1 = inlined_call_operand.vmem [shape: f32[2,6,256], index: 1, kind: output, shape index: {}]  }
   0x1   :  { %s12_s8 = sshll.u32 %s308_s0, 4  ;;  %s14_s10 = sshll.u32 %s194_s9, 4  ;;  %s13_s8 = int_to_ptr.hbm [resolvable:$true] %s12_s8  ;;  %s15_s10 = int_to_ptr.vmem [resolvable:$true] %s14_s10 }
   0x2   :  { %17 = dma.hbm_to_vmem [thread:$0]  %s13_s8, 64, %s15_s10, [#allocation3]  }
   0x3   :  { %192 = dma.done.wait [#allocation3], 64  }
   0x4   :  { %193 = vsyncadd [#allocation3], 4294967232  ;;  %v42_v0 = vlaneseq  ;;  %vm27_vm0 = vcmask 1040384   ;;  %vm29_vm1 = vcmask 1042434   ;;  %vm31_vm2 = vcmask 1041408  }
   0x5   :  { %vm33_vm4 = vcmask 1041409   ;;  %vm35_vm5 = vcmask 1043459   ;;  %vm37_vm6 = vcmask 1042433   ;;  %v22_v2 = vld [vmem:[#allocation2] sm:$0xf] }
   0x6   :  { %vm208_vm3 = vcmp.lt.s32.totalorder %v42_v0, 256  ;;  %v51_v3 = vld [vmem:[#allocation2] sm:$0xf]  ;;  %v24_v5 = vrot.slane %v22_v2, 1  ;;  %v25_v6 = vrot.slane %v22_v2, 2  ;;  %v26_v7 = vrot.slane %v22_v2, 3 }
   0x7   :  { %v71_v4 = vld [vmem:[#allocation2] sm:$0xf]  ;;  %v53_v8 = vrot.slane %v51_v3, 1  ;;  %v54_v9 = vrot.slane %v51_v3, 2  ;;  %v55_v10 = vrot.slane %v51_v3, 3 }
   0x8   :  { %v73_v11 = vrot.slane %v71_v4, 1  ;;  %v74_v12 = vrot.slane %v71_v4, 2  ;;  %v28_v13 = vsel %vm27_vm0, %v22_v2, %v24_v5  ;;  %v30_v14 = vsel %vm29_vm1, %v25_v6, %v26_v7  ;;  %v91_v21 = vld [vmem:[#allocation2] sm:$0xf] }
   0x9   :  { %v34_v15 = vsel %vm33_vm4, %v22_v2, %v24_v5  ;;  %v36_v16 = vsel %vm35_vm5, %v25_v6, %v26_v7  ;;  %v32_v17 = vsel %vm31_vm2, %v28_v13, %v30_v14  ;;  %v56_v19 = vsel %vm27_vm0, %v51_v3, %v53_v8  ;;  %v111_v26 = vld [vmem:[#allocation2] sm:$0xf] }
   0xa   :  { %v38_v18 = vsel %vm37_vm6, %v34_v15, %v36_v16  ;;  %v57_v20 = vsel %vm29_vm1, %v54_v9, %v55_v10  ;;  %46 = vst.msk [vmem:[%s309_s1] ss:$8 sm:$0x3] %vm208_vm3, %v32_v17  ;;  %v59_v24 = vsel %vm33_vm4, %v51_v3, %v53_v8  ;;  %v60_v25 = vsel %vm35_vm5, %v54_v9, %v55_v10  ;;  %v131_v42 = vld [vmem:[#allocation2] sm:$0xf] }
   0xb   :  { %v39_v22 = vrot.slane %v38_v18, 1  ;;  %v58_v23 = vsel %vm31_vm2, %v56_v19, %v57_v20  ;;  %v61_v27 = vsel %vm37_vm6, %v59_v24, %v60_v25  ;;  %v75_v28 = vrot.slane %v71_v4, 3 }
   0xc   :  { %157 = vst.msk [vmem:[%s309_s1 + $0x1] ss:$8 sm:$0x3] %vm208_vm3, %v58_v23  ;;  %v76_v29 = vsel %vm27_vm0, %v71_v4, %v73_v11  ;;  %v79_v30 = vsel %vm33_vm4, %v71_v4, %v73_v11  ;;  %v62_v31 = vrot.slane %v61_v27, 1  ;;  %v93_v32 = vrot.slane %v91_v21, 1 }
   0xd   :  { %156 = vst.msk [vmem:[%s309_s1 + $0x10] ss:$8 sm:$0x3] %vm208_vm3, %v39_v22  ;;  %v94_v33 = vrot.slane %v91_v21, 2  ;;  %v77_v34 = vsel %vm29_vm1, %v74_v12, %v75_v28  ;;  %v80_v35 = vsel %vm35_vm5, %v74_v12, %v75_v28  ;;  %v95_v36 = vrot.slane %v91_v21, 3 }
   0xe   :  { %v113_v37 = vrot.slane %v111_v26, 1  ;;  %158 = vst.msk [vmem:[%s309_s1 + $0x11] ss:$8 sm:$0x3] %vm208_vm3, %v62_v31  ;;  %v78_v38 = vsel %vm31_vm2, %v76_v29, %v77_v34  ;;  %v81_v39 = vsel %vm37_vm6, %v79_v30, %v80_v35  ;;  %v96_v40 = vsel %vm27_vm0, %v91_v21, %v93_v32 }
   0xf   :  { %v99_v41 = vsel %vm33_vm4, %v91_v21, %v93_v32  ;;  %159 = vst.msk [vmem:[%s309_s1 + $0x2] ss:$8 sm:$0x3] %vm208_vm3, %v78_v38  ;;  %v82_v43 = vrot.slane %v81_v39, 1  ;;  %v97_v44 = vsel %vm29_vm1, %v94_v33, %v95_v36  ;;  %v100_v45 = vsel %vm35_vm5, %v94_v33, %v95_v36 }
  0x10   :  { %v114_v46 = vrot.slane %v111_v26, 2  ;;  %v98_v47 = vsel %vm31_vm2, %v96_v40, %v97_v44  ;;  %v101_v48 = vsel %vm37_vm6, %v99_v41, %v100_v45  ;;  %v115_v49 = vrot.slane %v111_v26, 3 }
  0x11   :  { %v116_v50 = vsel %vm27_vm0, %v111_v26, %v113_v37  ;;  %160 = vst.msk [vmem:[%s309_s1 + $0x12] ss:$8 sm:$0x3] %vm208_vm3, %v82_v43  ;;  %v102_v51 = vrot.slane %v101_v48, 1  ;;  %v119_v52 = vsel %vm33_vm4, %v111_v26, %v113_v37  ;;  %v133_v53 = vrot.slane %v131_v42, 1 }
  0x12   :  { %v134_v54 = vrot.slane %v131_v42, 2  ;;  %161 = vst.msk [vmem:[%s309_s1 + $0x3] ss:$8 sm:$0x3] %vm208_vm3, %v98_v47  ;;  %v117_v55 = vsel %vm29_vm1, %v114_v46, %v115_v49  ;;  %v120_v56 = vsel %vm35_vm5, %v114_v46, %v115_v49  ;;  %v135_v57 = vrot.slane %v131_v42, 3 }
  0x13   :  { %162 = vst.msk [vmem:[%s309_s1 + $0x13] ss:$8 sm:$0x3] %vm208_vm3, %v102_v51  ;;  %v118_v58 = vsel %vm31_vm2, %v116_v50, %v117_v55  ;;  %v121_v59 = vsel %vm37_vm6, %v119_v52, %v120_v56  ;;  %v136_v60 = vsel %vm27_vm0, %v131_v42, %v133_v53  ;;  %v139_v61 = vsel %vm33_vm4, %v131_v42, %v133_v53 }
  0x14   :  { %163 = vst.msk [vmem:[%s309_s1 + $0x4] ss:$8 sm:$0x3] %vm208_vm3, %v118_v58  ;;  %v122_v62 = vrot.slane %v121_v59, 1  ;;  %v137_v63 = vsel %vm29_vm1, %v134_v54, %v135_v57  ;;  %v140_v0 = vsel %vm35_vm5, %v134_v54, %v135_v57 }
  0x15   :  { %v138_v2 = vsel %vm31_vm2, %v136_v60, %v137_v63  ;;  %v141_v3 = vsel %vm37_vm6, %v139_v61, %v140_v0 }
  0x16   :  { %164 = vst.msk [vmem:[%s309_s1 + $0x14] ss:$8 sm:$0x3] %vm208_vm3, %v122_v62  ;;  %v142_v4 = vrot.slane %v141_v3, 1 }
  0x17   :  { %165 = vst.msk [vmem:[%s309_s1 + $0x5] ss:$8 sm:$0x3] %vm208_vm3, %v138_v2 }
  0x18   :  { %166 = vst.msk [vmem:[%s309_s1 + $0x15] ss:$8 sm:$0x3] %vm208_vm3, %v142_v4 }
  0x19   :  { %155 = vsyncpa [#allocation3], 1 }

</bundles_post_ra>
